<compile_context>
chip_gen: v7x
topology: tpu7x:2x2x1
jax: 0.10.0
libtpu: 0.0.40
codegen_flags: <defaults>
</compile_context>

<pallas_src>
import functools

import jax
import jax.numpy as jnp
from jax.experimental import pallas as pl
from jax.experimental.pallas import tpu as pltpu


def _cdiv(a, b):
    return -(-a // b)


def _round_up(a, b):
    return _cdiv(a, b) * b


def _combined_loss_kernel(x_ref, t_ref, ce_ref, num_ref, den_ref, *, hw, need_mask):
    ni = pl.program_id(1)
    j = pl.program_id(2)

    # Init this core's accumulators on its first grid step.
    @pl.when((ni == 0) & (j == 0))
    def _():
        ce_ref[...] = jnp.zeros_like(ce_ref)
        num_ref[...] = jnp.zeros_like(num_ref)
        den_ref[...] = jnp.zeros_like(den_ref)

    x = x_ref[...].astype(jnp.float32)          # (1, C, T) logits (native dtype in HBM)
    t = t_ref[...]                              # (1, 1, T) int32 targets, lane-dense

    _, c, tlen = x.shape

    # Numerically stable softmax / logsumexp over the channel (sublane) axis.
    m = jnp.max(x, axis=1, keepdims=True)                    # (1, 1, T)
    ex = jnp.exp(x - m)                                       # (1, C, T)
    se = jnp.sum(ex, axis=1, keepdims=True)                   # (1, 1, T)
    inv_se = pl.reciprocal(se)                                 # exact recip (EUP), no per-element div
    p = ex * inv_se                                            # softmax(x, dim=C)
    e = jnp.exp(p)                                             # DiceLoss does output.exp() on softmax
    lse = m + jnp.log(se)                                      # (1, 1, T)

    # One-hot encode the target along the channel (sublane) axis.
    ch = jax.lax.broadcasted_iota(jnp.int32, (1, c, tlen), 1)  # (1, C, T)
    onehot = (ch == t).astype(jnp.float32)                     # (1, C, T)

    # Cross-entropy per pixel: lse - x[target]
    x_t = jnp.sum(x * onehot, axis=1, keepdims=True)           # (1, 1, T)
    ce_pix = lse - x_t                                         # (1, 1, T)

    if need_mask:
        # Mask pixels beyond the real H*W (lane padding of the last tile).
        tile_idx = pl.program_id(0) * pl.num_programs(2) + j
        lane = jax.lax.broadcasted_iota(jnp.int32, (1, 1, tlen), 2)
        mask = ((tile_idx * tlen + lane) < hw).astype(jnp.float32)  # (1, 1, T)
        ce_pix = ce_pix * mask
        onehot = onehot * mask
        e = e * mask

    # Dice accumulators (per-channel sums over pixels = lane reduction).
    num_blk = jnp.sum(e * onehot, axis=2, keepdims=True)       # (1, C, 1)
    den_blk = jnp.sum(e + onehot, axis=2, keepdims=True)       # (1, C, 1)

    ce_ref[...] += jnp.sum(ce_pix)
    num_ref[...] += num_blk
    den_ref[...] += den_blk


def combined_loss(logits_nchw, target_nhw, weight, *,
                  max_hw_tile=32768, num_core_split=2):
    """Replicates CombinedLoss.forward(input, target, weight)."""
    n, c, h, w = logits_nchw.shape
    hw = h * w

    # Natural layout: no transpose, keep native logit dtype (cast to f32 in-kernel).
    x = logits_nchw.reshape(n, c, hw)
    t = target_nhw.reshape(n, 1, hw).astype(jnp.int32)

    lane = 128
    hw_tile = min(max_hw_tile, _round_up(hw, lane))            # lane-dense tile (multiple of 128)
    n_tiles = _cdiv(hw, hw_tile)
    num_split = num_core_split if n_tiles >= num_core_split else 1
    tiles_per_core = _cdiv(n_tiles, num_split)
    hw_pad = num_split * tiles_per_core * hw_tile
    need_mask = hw_pad != hw

    if need_mask:
        x = jnp.pad(x, ((0, 0), (0, 0), (0, hw_pad - hw)))
        t = jnp.pad(t, ((0, 0), (0, 0), (0, hw_pad - hw)))

    grid = (num_split, n, tiles_per_core)

    kernel = functools.partial(_combined_loss_kernel, hw=hw, need_mask=need_mask)

    out_shapes = (
        jax.ShapeDtypeStruct((num_split, 1, 1), jnp.float32),   # ce partials per core
        jax.ShapeDtypeStruct((num_split, c, 1), jnp.float32),   # num partials per core
        jax.ShapeDtypeStruct((num_split, c, 1), jnp.float32),   # den partials per core
    )

    ce_part, num_part, den_part = pl.pallas_call(
        kernel,
        out_shape=out_shapes,
        grid_spec=pltpu.PrefetchScalarGridSpec(
            num_scalar_prefetch=0,
            grid=grid,
            in_specs=[
                pl.BlockSpec((1, c, hw_tile),
                             lambda core, ni, j: (ni, 0, core * tiles_per_core + j)),
                pl.BlockSpec((1, 1, hw_tile),
                             lambda core, ni, j: (ni, 0, core * tiles_per_core + j)),
            ],
            out_specs=[
                pl.BlockSpec((1, 1, 1), lambda core, ni, j: (core, 0, 0)),
                pl.BlockSpec((1, c, 1), lambda core, ni, j: (core, 0, 0)),
                pl.BlockSpec((1, c, 1), lambda core, ni, j: (core, 0, 0)),
            ],
        ),
        compiler_params=pltpu.CompilerParams(
            dimension_semantics=("parallel", "arbitrary", "arbitrary")),
    )(x, t)

    # Scalar epilogue (matches the PyTorch math).
    p_total = n * hw
    eps = 0.0001
    ce_mean = jnp.sum(ce_part) / p_total                        # nn.CrossEntropyLoss mean
    num_c = jnp.sum(num_part, axis=0)[:, 0]                     # (C,)
    den_c = jnp.sum(den_part, axis=0)[:, 0]                     # (C,)
    dice = jnp.sum(1.0 - (2.0 * num_c) / (den_c + eps)) / c     # DiceLoss return
    y2 = dice                                                   # torch.mean(scalar) = scalar
    y1 = jnp.mean(ce_mean * weight.astype(jnp.float32))         # mean(ce * weight)
    return y1 + 0.5 * y2


def _reference_combined_loss(logits_nchw, target_nhw, weight):
    # Pure-JAX reference that mirrors the PyTorch math exactly.
    n, c, h, w = logits_nchw.shape
    x = logits_nchw.astype(jnp.float32)
    t = target_nhw.astype(jnp.int32)

    # CrossEntropyLoss (mean over N*H*W)
    logp = jax.nn.log_softmax(x, axis=1)                          # (N,C,H,W)
    onehot = jax.nn.one_hot(t, c, axis=1, dtype=jnp.float32)      # (N,C,H,W)
    ce = -jnp.sum(logp * onehot, axis=1)                          # (N,H,W)
    ce_mean = jnp.mean(ce)

    # DiceLoss on exp(softmax(x))
    out = jnp.exp(jax.nn.softmax(x, axis=1))
    eps = 0.0001
    numerator = 2.0 * jnp.sum(out * onehot, axis=(0, 2, 3))
    denominator = jnp.sum(out + onehot, axis=(0, 2, 3)) + eps
    dice = jnp.sum(1.0 - numerator / denominator) / c

    y1 = jnp.mean(ce_mean * weight.astype(jnp.float32))
    return y1 + 0.5 * dice


if __name__ == "__main__":
    key = jax.random.PRNGKey(0)

    loss_fn = jax.jit(combined_loss,
                      static_argnames=("max_hw_tile", "num_core_split"))

    # (H, W, max_hw_tile) cases: exact-fit, mask path, multi-tile + 2-way split.
    cases = [
        (16, 16, 32768),   # hw=256: single tile, no padding
        (13, 13, 32768),   # hw=169: padded to 256, mask path
        (30, 30, 128),     # hw=900: 8 tiles, 2-way parallel split, mask path
    ]

    for h, w, max_tile in cases:
        k1, k2, k3, key = jax.random.split(key, 4)
        N, C = 2, 4
        logits = jax.random.normal(k1, (N, C, h, w), dtype=jnp.float32)
        target = jax.random.randint(k2, (N, h, w), 0, C, dtype=jnp.int32)
        weight = jax.random.uniform(k3, (N,), dtype=jnp.float32)

        y = loss_fn(logits, target, weight, max_hw_tile=max_tile)
        y = jax.block_until_ready(y)

        y_ref = _reference_combined_loss(logits, target, weight)
        assert jnp.allclose(y, y_ref, rtol=1e-5, atol=1e-5), (h, w, y, y_ref)

    print("KERNEL_OK")
</pallas_src>

<mosaic_0001>
module attributes {stable_mosaic.version = 11 : i64} {
  func.func @_combined_loss_kernel(%arg0: i32, %arg1: i32, %arg2: i32, %arg3: memref<1x4x256xf32, #tpu.memory_space<vmem>>, %arg4: memref<1x1x256xi32, #tpu.memory_space<vmem>>, %arg5: memref<1x1x1xf32, #tpu.memory_space<vmem>>, %arg6: memref<1x4x1xf32, #tpu.memory_space<vmem>>, %arg7: memref<1x4x1xf32, #tpu.memory_space<vmem>>) attributes {dimension_semantics = [#tpu.dimension_semantics<parallel>, #tpu.dimension_semantics<arbitrary>, #tpu.dimension_semantics<arbitrary>], iteration_bounds = array<i64: 1, 2, 1>, scalar_prefetch = 0 : i64, scratch_operands = 0 : i64, tpu.core_type = #tpu.core_type<tc>, window_params = [{transform_indices = @transform_0, window_bounds = array<i64: 1, 4, 256>}, {transform_indices = @transform_1, window_bounds = array<i64: 1, 1, 256>}, {transform_indices = @transform_2, window_bounds = array<i64: 1, 1, 1>}, {transform_indices = @transform_3, window_bounds = array<i64: 1, 4, 1>}, {transform_indices = @transform_4, window_bounds = array<i64: 1, 4, 1>}]} {
    %c0_i32 = arith.constant 0 : i32
    %0 = arith.cmpi eq, %arg1, %c0_i32 : i32
    %c0_i32_0 = arith.constant 0 : i32
    %1 = arith.cmpi eq, %arg2, %c0_i32_0 : i32
    %2 = arith.andi %0, %1 : i1
    %3 = arith.extui %2 : i1 to i32
    %c0_i32_1 = arith.constant 0 : i32
    %4 = arith.cmpi ne, %3, %c0_i32_1 : i32
    scf.if %4 {
      %cst_30 = arith.constant 0.000000e+00 : f32
      %49 = vector.broadcast %cst_30 : f32 to vector<1x1x1xf32>
      %c0_31 = arith.constant 0 : index
      %c0_32 = arith.constant 0 : index
      %c0_33 = arith.constant 0 : index
      %50 = vector.load %arg5[%c0_31, %c0_32, %c0_33] : memref<1x1x1xf32, #tpu.memory_space<vmem>>, vector<1x1x1xf32>
      tpu.vector_store %arg5[%c0_31, %c0_32, %c0_33], %49 {strides = array<i32>} : memref<1x1x1xf32, #tpu.memory_space<vmem>>, vector<1x1x1xf32>,
      %cst_34 = arith.constant 0.000000e+00 : f32
      %51 = vector.broadcast %cst_34 : f32 to vector<1x4x1xf32>
      %c0_35 = arith.constant 0 : index
      %c0_36 = arith.constant 0 : index
      %c0_37 = arith.constant 0 : index
      %52 = vector.load %arg6[%c0_35, %c0_36, %c0_37] : memref<1x4x1xf32, #tpu.memory_space<vmem>>, vector<1x4x1xf32>
      tpu.vector_store %arg6[%c0_35, %c0_36, %c0_37], %51 {strides = array<i32>} : memref<1x4x1xf32, #tpu.memory_space<vmem>>, vector<1x4x1xf32>,
      %cst_38 = arith.constant 0.000000e+00 : f32
      %53 = vector.broadcast %cst_38 : f32 to vector<1x4x1xf32>
      %c0_39 = arith.constant 0 : index
      %c0_40 = arith.constant 0 : index
      %c0_41 = arith.constant 0 : index
      %54 = vector.load %arg7[%c0_39, %c0_40, %c0_41] : memref<1x4x1xf32, #tpu.memory_space<vmem>>, vector<1x4x1xf32>
      tpu.vector_store %arg7[%c0_39, %c0_40, %c0_41], %53 {strides = array<i32>} : memref<1x4x1xf32, #tpu.memory_space<vmem>>, vector<1x4x1xf32>,
    } else {
    }
    %c0 = arith.constant 0 : index
    %c0_2 = arith.constant 0 : index
    %c0_3 = arith.constant 0 : index
    %5 = vector.load %arg3[%c0, %c0_2, %c0_3] : memref<1x4x256xf32, #tpu.memory_space<vmem>>, vector<1x4x256xf32>
    %c0_4 = arith.constant 0 : index
    %c0_5 = arith.constant 0 : index
    %c0_6 = arith.constant 0 : index
    %6 = vector.load %arg4[%c0_4, %c0_5, %c0_6] : memref<1x1x256xi32, #tpu.memory_space<vmem>>, vector<1x1x256xi32>
    %cst = arith.constant dense<0xFF800000> : vector<1x256xf32>
    %7 = vector.multi_reduction <maximumf>, %5, %cst [1] : vector<1x4x256xf32> to vector<1x256xf32>
    %8 = vector.shape_cast %7 : vector<1x256xf32> to vector<1x1x256xf32>
    %9 = vector.broadcast %8 : vector<1x1x256xf32> to vector<1x4x256xf32>
    %10 = arith.subf %5, %9 : vector<1x4x256xf32>
    %11 = math.exp %10 : vector<1x4x256xf32>
    %cst_7 = arith.constant dense<0.000000e+00> : vector<1x256xf32>
    %12 = vector.multi_reduction <add>, %11, %cst_7 [1] : vector<1x4x256xf32> to vector<1x256xf32>
    %13 = vector.shape_cast %12 : vector<1x256xf32> to vector<1x1x256xf32>
    %14 = tpu.reciprocal %13 : vector<1x1x256xf32> -> vector<1x1x256xf32>
    %15 = vector.broadcast %14 : vector<1x1x256xf32> to vector<1x4x256xf32>
    %16 = arith.mulf %11, %15 : vector<1x4x256xf32>
    %17 = math.exp %16 : vector<1x4x256xf32>
    %18 = math.log %13 : vector<1x1x256xf32>
    %19 = arith.addf %8, %18 : vector<1x1x256xf32>
    %20 = tpu.iota {dimensions = array<i32: 1>} : vector<1x4x256xi32>
    %21 = vector.broadcast %6 : vector<1x1x256xi32> to vector<1x4x256xi32>
    %22 = arith.cmpi eq, %20, %21 : vector<1x4x256xi32>
    %23 = arith.extui %22 : vector<1x4x256xi1> to vector<1x4x256xi32>
    %24 = arith.sitofp %23 : vector<1x4x256xi32> to vector<1x4x256xf32>
    %25 = arith.mulf %5, %24 : vector<1x4x256xf32>
    %cst_8 = arith.constant dense<0.000000e+00> : vector<1x256xf32>
    %26 = vector.multi_reduction <add>, %25, %cst_8 [1] : vector<1x4x256xf32> to vector<1x256xf32>
    %27 = vector.shape_cast %26 : vector<1x256xf32> to vector<1x1x256xf32>
    %28 = arith.subf %19, %27 : vector<1x1x256xf32>
    %29 = arith.mulf %17, %24 : vector<1x4x256xf32>
    %cst_9 = arith.constant dense<0.000000e+00> : vector<1x4xf32>
    %30 = vector.multi_reduction <add>, %29, %cst_9 [2] : vector<1x4x256xf32> to vector<1x4xf32>
    %31 = vector.shape_cast %30 : vector<1x4xf32> to vector<1x4x1xf32>
    %32 = arith.addf %17, %24 : vector<1x4x256xf32>
    %cst_10 = arith.constant dense<0.000000e+00> : vector<1x4xf32>
    %33 = vector.multi_reduction <add>, %32, %cst_10 [2] : vector<1x4x256xf32> to vector<1x4xf32>
    %34 = vector.shape_cast %33 : vector<1x4xf32> to vector<1x4x1xf32>
    %c0_11 = arith.constant 0 : index
    %c0_12 = arith.constant 0 : index
    %c0_13 = arith.constant 0 : index
    %35 = vector.load %arg5[%c0_11, %c0_12, %c0_13] : memref<1x1x1xf32, #tpu.memory_space<vmem>>, vector<1x1x1xf32>
    %36 = vector.shape_cast %28 : vector<1x1x256xf32> to vector<1x1x1x256xf32>
    %cst_14 = arith.constant dense<0.000000e+00> : vector<1xf32>
    %37 = vector.multi_reduction <add>, %36, %cst_14 [1, 2, 3] : vector<1x1x1x256xf32> to vector<1xf32>
    %38 = vector.shape_cast %37 : vector<1xf32> to vector<1x1x1x1xf32>
    %39 = vector.extract %38[0, 0, 0, 0] : f32 from vector<1x1x1x1xf32>
    %40 = vector.broadcast %39 : f32 to vector<1x1x1xf32>
    %41 = arith.addf %35, %40 : vector<1x1x1xf32>
    %c0_15 = arith.constant 0 : index
    %c0_16 = arith.constant 0 : index
    %c0_17 = arith.constant 0 : index
    %42 = vector.load %arg5[%c0_15, %c0_16, %c0_17] : memref<1x1x1xf32, #tpu.memory_space<vmem>>, vector<1x1x1xf32>
    tpu.vector_store %arg5[%c0_15, %c0_16, %c0_17], %41 {strides = array<i32>} : memref<1x1x1xf32, #tpu.memory_space<vmem>>, vector<1x1x1xf32>,
    %c0_18 = arith.constant 0 : index
    %c0_19 = arith.constant 0 : index
    %c0_20 = arith.constant 0 : index
    %43 = vector.load %arg6[%c0_18, %c0_19, %c0_20] : memref<1x4x1xf32, #tpu.memory_space<vmem>>, vector<1x4x1xf32>
    %44 = arith.addf %43, %31 : vector<1x4x1xf32>
    %c0_21 = arith.constant 0 : index
    %c0_22 = arith.constant 0 : index
    %c0_23 = arith.constant 0 : index
    %45 = vector.load %arg6[%c0_21, %c0_22, %c0_23] : memref<1x4x1xf32, #tpu.memory_space<vmem>>, vector<1x4x1xf32>
    tpu.vector_store %arg6[%c0_21, %c0_22, %c0_23], %44 {strides = array<i32>} : memref<1x4x1xf32, #tpu.memory_space<vmem>>, vector<1x4x1xf32>,
    %c0_24 = arith.constant 0 : index
    %c0_25 = arith.constant 0 : index
    %c0_26 = arith.constant 0 : index
    %46 = vector.load %arg7[%c0_24, %c0_25, %c0_26] : memref<1x4x1xf32, #tpu.memory_space<vmem>>, vector<1x4x1xf32>
    %47 = arith.addf %46, %34 : vector<1x4x1xf32>
    %c0_27 = arith.constant 0 : index
    %c0_28 = arith.constant 0 : index
    %c0_29 = arith.constant 0 : index
    %48 = vector.load %arg7[%c0_27, %c0_28, %c0_29] : memref<1x4x1xf32, #tpu.memory_space<vmem>>, vector<1x4x1xf32>
    tpu.vector_store %arg7[%c0_27, %c0_28, %c0_29], %47 {strides = array<i32>} : memref<1x4x1xf32, #tpu.memory_space<vmem>>, vector<1x4x1xf32>,
    return
  }
  func.func @transform_0(%arg0: i32, %arg1: i32, %arg2: i32) -> (i32, i32, i32) {
    %c1_i32 = arith.constant 1 : i32
    %0 = arith.muli %arg0, %c1_i32 : i32
    %1 = arith.addi %0, %arg2 : i32
    %c0_i32 = arith.constant 0 : i32
    %c0_i32_0 = arith.constant 0 : i32
    return %arg1, %c0_i32, %1 : i32, i32, i32
  }
  func.func @transform_1(%arg0: i32, %arg1: i32, %arg2: i32) -> (i32, i32, i32) {
    %c1_i32 = arith.constant 1 : i32
    %0 = arith.muli %arg0, %c1_i32 : i32
    %1 = arith.addi %0, %arg2 : i32
    %c0_i32 = arith.constant 0 : i32
    %c0_i32_0 = arith.constant 0 : i32
    return %arg1, %c0_i32, %1 : i32, i32, i32
  }
  func.func @transform_2(%arg0: i32, %arg1: i32, %arg2: i32) -> (i32, i32, i32) {
    %c0_i32 = arith.constant 0 : i32
    %c0_i32_0 = arith.constant 0 : i32
    %c0_i32_1 = arith.constant 0 : i32
    return %arg0, %c0_i32, %c0_i32_0 : i32, i32, i32
  }
  func.func @transform_3(%arg0: i32, %arg1: i32, %arg2: i32) -> (i32, i32, i32) {
    %c0_i32 = arith.constant 0 : i32
    %c0_i32_0 = arith.constant 0 : i32
    %c0_i32_1 = arith.constant 0 : i32
    return %arg0, %c0_i32, %c0_i32_0 : i32, i32, i32
  }
  func.func @transform_4(%arg0: i32, %arg1: i32, %arg2: i32) -> (i32, i32, i32) {
    %c0_i32 = arith.constant 0 : i32
    %c0_i32_0 = arith.constant 0 : i32
    %c0_i32_1 = arith.constant 0 : i32
    return %arg0, %c0_i32, %c0_i32_0 : i32, i32, i32
  }
}

</mosaic_0001>

<bundles_post_ra>
// kernel: combined_loss.1
= control target key start
LH: loop header
LB: loop body
LE: loop exit
PB: predicated region body
PF: predicated region fallthrough
CT: control target
= control target key end

     0   :  { %10 = vsyncpa [#allocation3], 0  ;;  %s732_s15 = smov 0   ;;  %s734_s16 = smov 0   ;;  %s822_s0 = inlined_call_operand.vmem [shape: f32[2,4,256], index: 0, kind: input, shape index: {}]   ;;  %s823_s1 = inlined_call_operand.vmem [shape: s32[2,1,256], index: 1, kind: input, shape index: {}]   ;;  %s824_s2 = inlined_call_operand.hbm [shape: f32[1,1,1], index: 2, kind: output, shape index: {0}]   ;;  %s825_s3 = inlined_call_operand.vmem [shape: f32[1,4,1], index: 3, kind: output, shape index: {1}]   ;;  %s826_s4 = inlined_call_operand.vmem [shape: f32[1,4,1], index: 4, kind: output, shape index: {2}]  }
   0x1   :  { %s736_s17 = smov 0  }
   0x2 LB: > { %s584_s18 = sadd.s32 4294967295, %s702_s17   ;;  %s31_s19 = sadd.s32 1, %s698_s16  ;;  %s702_s17 = sphi %s736_s17, %s16_s17   ;;  %s698_s16 = sphi %s734_s16, %s829_s16   ;;  %s694_s15 = sphi %s732_s15, %s828_s15  }
   0x3   : > { %p33_p0 = scmp.ge.s32.totalorder %s31_s19, 2  ;;  %p587_p1 = scmp.ge.s32.totalorder %s702_s17, 1 }
   0x4   : > { %p218_p2 = scmp.lt.s32.totalorder %s702_s17, 3 }
   0x5   : > { %s831_s19 = smov (%p33_p0, %s31_s19), 0 }
   0x6   : > { %p219_p3 = pnand %p587_p1, %p218_p2 }
   0x7   : > { %p263_p4 = scmp.lt.s32.totalorder (!%p219_p3), %s694_s15, 1  ;;  %p292_p5 = scmp.eq.s32.totalorder (!%p219_p3), %s694_s15, 0 }
   0x8   : > { %222 = sbr.rel (%p219_p3) target bundleno = 312 (0x138), region = 28 }
   0xf   : > { %s833_s15 = smov (!%p263_p4, %s694_s15), 1  ;;  %297 = sbr.rel (!%p292_p5) target bundleno = 22 (0x16), region = 32 }
  0x10   : > { %s600_s20 = sshll.u32 %s833_s15, 3  ;;  %s590_s21 = sshll.u32 %s833_s15, 1  ;;  %vm298_vm0 = vcmask (%p292_p5), 0   ;;  %vm300_vm1 = vcmask (%p292_p5), 3072   ;;  %v704_v0 = vmov (%p292_p5), 0.0  }
  0x11   : > { %s270_s24 = scalar_lea.vmem %s822_s0, %s600_s20  ;;  %s281_s27 = scalar_lea.vmem %s823_s1, %s590_s21  ;;  %299 = vst.msk [vmem:[#allocation2] sm:$0x1] (%p292_p5), %vm298_vm0, %v704_v0 }
  0x12   : > { %301 = vst.msk [vmem:[%s825_s3] sm:$0xf] (%p292_p5), %vm300_vm1, %v704_v0  ;;  %302 = vst.msk [vmem:[%s826_s4] sm:$0xf] (%p292_p5), %vm300_vm1, %v704_v0 }
  0x16 PF: > { %v303_v1 = vld [vmem:[%s270_s24] sm:$0xff]  ;;  %vm308_vm2 = vcmask 1043456   ;;  %v362_v5 = vlaneseq  ;;  %v705_v27 = vmov 0.0   ;;  %vm421_vm5 = vcmask 1040384   ;;  %s706_s14 = smov [#allocation2]   ;;  %p787_p6 = scmp.eq.s32.totalorder %s584_s18, 1 }
  0x17   : > { %v306_v2 = vcombine.high %v303_v1, %v303_v1  ;;  %v309_v3 = vsel %vm308_vm2, %v303_v1, -inf  ;;  %v304_v18 = vld [vmem:[%s281_s27] sm:$0x3]  ;;  %vm440_vm6 = vcmask 3072   ;;  %s462_s15 = sshll.u32 %s706_s14, 4  ;;  %vm436_vm7 = vcmask 0   ;;  %s463_s15 = int_to_ptr.vmem [resolvable:$true] %s462_s15 }
  0x18   : > { %v310_v4 = vrot.slane %v309_v3, 4  ;;  %v363_v11 = vshrl.u32 %v362_v5, 7  ;;  %s650_s22 = scalar_lea.vmem %s463_s15, 16  ;;  %s656_s23 = scalar_lea.vmem %s463_s15, 32 }
  0x19   : > { %v316_v6 = vsel %vm308_vm2, %v306_v2, -inf  ;;  %p651_p7 = scmp.ne.s32.totalorder %s463_s15, %s650_s22  ;;  %p657_p10 = scmp.lt.s32.totalorder %s463_s15, %s463_s15 }
  0x1a   : > { %v311_v7 = vmax.f32 %v309_v3, %v310_v4  ;;  %v317_v8 = vrot.slane %v316_v6, 4  ;;  %v366_v16 = vsub.s32 0, %v363_v11  ;;  %v370_v17 = vsub.s32 1, %v363_v11  ;;  %p658_p11 = scmp.lt.s32.totalorder %s656_s23, %s650_s22 }
  0x1b   : > { %p652_p8 = pnand %p651_p7, %p787_p6 }
  0x1c   : > { %v312_v9 = vrot.slane %v311_v7, 2  ;;  %v318_v10 = vmax.f32 %v316_v6, %v317_v8  ;;  %v367_v22 = vrot.slane %v304_v18, %v366_v16  ;;  %v371_v23 = vrot.slane %v304_v18, %v370_v17  ;;  %p659_p12 = por %p658_p11, %p657_p10 }
  0x1d   : > { %p653_p9 = pneg %p652_p8 }
  0x1e   : > { %v313_v12 = vmax.f32 %v311_v7, %v312_v9  ;;  %v319_v13 = vrot.slane %v318_v10, 2  ;;  %vm372_vm3 = vcmp.eq.s32.totalorder %v363_v11, %v367_v22  ;;  %vm373_vm4 = vcmp.eq.s32.totalorder %v363_v11, %v371_v23 }
  0x1f   : > { %v592_v28 = vsel %vm372_vm3, 1.0, %v705_v27  ;;  %v593_v29 = vsel %vm373_vm4, 1.0, %v705_v27  ;;  %p660_p13 = pnand %p659_p12, %p653_p9 }
  0x20   : > { %v314_v14 = vrot.slane %v313_v12, 1  ;;  %v320_v15 = vmax.f32 %v318_v10, %v319_v13  ;;  %v380_v30 = vcombine.low %v592_v28, %v593_v29 }
  0x22   : > { %v315_v19 = vmax.f32 %v313_v12, %v314_v14  ;;  %v321_v20 = vrot.slane %v320_v15, 1  ;;  %v382_v31 = vmul.f32 %v380_v30, %v303_v1 }
  0x24   : > { %v322_v21 = vmax.f32 %v320_v15, %v321_v20  ;;  %v384_v33 = vcombine.high %v382_v31, %v382_v31  ;;  %v386_v38 = vsel %vm308_vm2, %v382_v31, 0.0 }
  0x25   : > { %v387_v44 = vrot.slane %v386_v38, 4 }
  0x26   : > { %v325_v24 = vcombine.low %v315_v19, %v322_v21  ;;  %v393_v41 = vsel %vm308_vm2, %v384_v33, 0.0  ;;  %v442_v33 = vld [vmem:[%s826_s4] sm:$0xf] }
  0x27   : > { %v394_v45 = vrot.slane %v393_v41, 4  ;;  %v388_v50 = vadd.f32 %v387_v44, %v386_v38 }
  0x28   : > { %v327_v25 = vsub.f32 %v303_v1, %v325_v24 }
  0x29   : > { %v395_v51 = vadd.f32 %v394_v45, %v393_v41  ;;  %v389_v55 = vrot.slane %v388_v50, 2 }
  0x2a   : > { %v328_v26 = vmul.f32 1.442695, %v327_v25 }
  0x2b   : > { %v396_v56 = vrot.slane %v395_v51, 2  ;;  %v390_v57 = vadd.f32 %v389_v55, %v388_v50 }
  0x2c   : > { %638 = vpow2.f32 %v328_v26 }
  0x2d   : > { %v397_v58 = vadd.f32 %v396_v56, %v395_v51  ;;  %v391_v59 = vrot.slane %v390_v57, 1 }
  0x2f   : > { %v398_v60 = vrot.slane %v397_v58, 1  ;;  %v392_v1 = vadd.f32 %v391_v59, %v390_v57 }
  0x31   : > { %v399_v4 = vadd.f32 %v398_v60, %v397_v58 }
  0x36   : > { %v639_v32 = vpop.eup %638 }
  0x37   : > { %v331_v34 = vcombine.high %v639_v32, %v639_v32  ;;  %v333_v35 = vsel %vm308_vm2, %v639_v32, 0.0 }
  0x38   : > { %v334_v36 = vrot.slane %v333_v35, 4 }
  0x39   : > { %v340_v37 = vsel %vm308_vm2, %v331_v34, 0.0  ;;  %v438_v34 = vld [vmem:[%s825_s3] sm:$0xf] }
  0x3a   : > { %v335_v39 = vadd.f32 %v334_v36, %v333_v35  ;;  %v341_v40 = vrot.slane %v340_v37, 4 }
  0x3c   : > { %v336_v42 = vrot.slane %v335_v39, 2  ;;  %v342_v43 = vadd.f32 %v341_v40, %v340_v37 }
  0x3e   : > { %v337_v46 = vadd.f32 %v336_v42, %v335_v39  ;;  %v343_v47 = vrot.slane %v342_v43, 2  ;;  %v420_v39 = vld [vmem:[#allocation2] sm:$0x1] }
  0x40   : > { %v338_v48 = vrot.slane %v337_v46, 1  ;;  %v344_v49 = vadd.f32 %v343_v47, %v342_v43 }
  0x42   : > { %v339_v52 = vadd.f32 %v338_v48, %v337_v46  ;;  %v345_v53 = vrot.slane %v344_v49, 1 }
  0x44   : > { %v346_v54 = vadd.f32 %v345_v53, %v344_v49  ;;  %640 = vrcp.f32 %v339_v52 }
  0x45   : > { %642 = vlog2.f32 %v339_v52 }
  0x46   : > { %644 = vlog2.f32 %v346_v54 }
  0x47   : > { %646 = vrcp.f32 %v346_v54 }
  0x4e   : > { %v641_v61 = vpop.eup %640 }
  0x4f   : > { %v643_v62 = vpop.eup %642 }
  0x50   : > { %v645_v63 = vpop.eup %644  ;;  %v357_v0 = vmul.f32 0.6931472, %v643_v62 }
  0x51   : > { %v647_v2 = vpop.eup %646  ;;  %v359_v3 = vmul.f32 0.6931472, %v645_v63 }
  0x52   : > { %v360_v5 = vadd.f32 %v357_v0, %v315_v19  ;;  %v351_v6 = vcombine.low %v641_v61, %v647_v2 }
  0x53   : > { %v361_v7 = vadd.f32 %v359_v3, %v322_v21 }
  0x54   : > { %v400_v8 = vsub.f32 %v360_v5, %v392_v1  ;;  %v353_v9 = vmul.f32 %v639_v32, %v351_v6 }
  0x55   : > { %v401_v10 = vsub.f32 %v361_v7, %v399_v4 }
  0x56   : > { %v422_v11 = vsel %vm421_vm5, %v400_v8, 0.0  ;;  %v354_v12 = vmul.f32 1.442695, %v353_v9 }
  0x57   : > { %v423_v13 = vsel %vm421_vm5, %v401_v10, 0.0 }
  0x58   : > { %v424_v14 = vadd.f32 %v423_v13, %v422_v11  ;;  %648 = vpow2.f32 %v354_v12 }
  0x5a   : > { %425 = vadd.xlane.f32.xlu0 %v424_v14 }
  0x62   : > { %v649_v15 = vpop.eup %648 }
  0x63   : > { %v411_v16 = vadd.f32 %v649_v15, %v380_v30  ;;  %v402_v17 = vmul.f32 %v649_v15, %v380_v30 }
  0x65   : > { %v413_v18 = vcombine.high %v411_v16, %v411_v16  ;;  %v415_v20 = vsel %vm308_vm2, %v411_v16, 0.0  ;;  %v404_v22 = vcombine.high %v402_v17, %v402_v17  ;;  %v406_v19 = vsel %vm308_vm2, %v402_v17, 0.0 }
  0x67   : > { %v416_v21 = vsel %vm308_vm2, %v413_v18, 0.0  ;;  %v407_v23 = vsel %vm308_vm2, %v404_v22, 0.0 }
  0x68   : > { %v417_v24 = vadd.f32 %v416_v21, %v415_v20  ;;  %v408_v25 = vadd.f32 %v407_v23, %v406_v19 }
  0x6a   : > { %418 = vadd.xlane.f32.xlu1 %v417_v24  ;;  %409 = vadd.xlane.f32.xlu0 %v408_v25 }
  0xe7   : > { %v426_v26 = vpop.xlane.xlu0 %425 }
  0xe8   : > { %v427_v27 = vrot.slane %v426_v26, 4 }
  0xea   : > { %v428_v28 = vadd.f32 %v427_v27, %v426_v26 }
  0xec   : > { %v429_v29 = vrot.slane %v428_v28, 2 }
  0xee   : > { %v430_v31 = vadd.f32 %v429_v29, %v428_v28 }
  0xf0   : > { %v431_v30 = vrot.slane %v430_v31, 1 }
  0xf2   : > { %v432_v32 = vadd.f32 %v431_v30, %v430_v31 }
  0xf4   : > { %602 = vpush %v432_v32 }
  0xf7   : > { %v419_v35 = vpop.xlane.xlu1 %418  ;;  %v410_v36 = vpop.xlane.xlu0 %409 }
  0xf8   : > { %v443_v37 = vadd.f32 %v442_v33, %v419_v35  ;;  %v439_v38 = vadd.f32 %v438_v34, %v410_v36 }
  0xfa   : > { %444 = vst.msk [vmem:[%s826_s4] sm:$0xf] %vm440_vm6, %v443_v37  ;;  %441 = vst.msk [vmem:[%s825_s3] sm:$0xf] %vm440_vm6, %v439_v38 }
 0x125   : > { %s603_s20 = spop %602 }
 0x126   : > { %v434_v40 = vstv %s603_s20 }
 0x127   : > { %v435_v41 = vadd.f32 %v434_v40, %v420_v39 }
 0x129   : > { %437 = vst.msk [vmem:[#allocation2] sm:$0x1] %vm436_vm7, %v435_v41 }
 0x12a   : > { %663 = shalt.err (!%p660_p13)
}
 0x12b   : > { %s664_s25 = scalar_lea.hbm %s824_s2, 16 }
 0x12c   : > { %p665_p0 = scmp.ne.s32.totalorder %s824_s2, %s664_s25  ;;  %p670_p3 = scmp.lt.u32.totalorder %s664_s25, %s824_s2 }
 0x12e   : > { %p666_p1 = pnand %p665_p0, %p787_p6 }
 0x130   : > { %p667_p2 = pneg %p666_p1 }
 0x132   : > { %p672_p4 = pnand %p670_p3, %p667_p2 }
 0x134   : > { %675 = shalt.err (!%p672_p4)
}
 0x135   : > { %605 = dma.vmem_to_hbm [thread:$0]  (%p787_p6), %s463_s15, 16, %s824_s2, [#allocation3]  }
 0x136   : > { %689 = dma.done.wait (%p787_p6), [#allocation3], 16  }
 0x137   : > { %691 = vsyncadd (%p787_p6), [#allocation3], 4294967280 }
 0x138 PF: > { %s16_s17 = sadd.s32 1, %s702_s17   ;;  %s828_s15 = smov %s698_s16 }
 0x139   : > { %p13_p5 = scmp.ge.s32.totalorder %s16_s17, 4   ;;  %s829_s16 = smov %s831_s19 }
 0x13b   :  { %15 = sbr.rel (!%p13_p5) target bundleno = 2 (0x2), region = 87 }
 0x142   :  { %495 = vsyncpa [#allocation3], 1 }
 0x143   :  { %497 = vsyncpa [#allocation3 + $0x1], 1 }

</bundles_post_ra>
